<compile_context>
chip_gen: v6e
topology: v6e:2x2x1
jax: 0.10.0
libtpu: 0.0.40
codegen_flags: <defaults>
</compile_context>

<pallas_src>
import functools

import jax
import jax.numpy as jnp
from jax.experimental import pallas as pl
from jax.experimental.pallas import tpu as pltpu


def policy_kernel(x_ref, w1_ref, b1_ref, w2d_ref, b2d_ref, o_ref):
    x = x_ref[...]                                   # (2, TB)   batch on the lane axis
    w1 = w1_ref[...]                                 # (128, 2)  PyTorch fc1.weight

    # fc1 as a broadcast-FMA on the VPU (K=2 never touches the MXU):
    #   h[j, b] = w1[j,0]*x[0,b] + w1[j,1]*x[1,b] + b1[j]
    h = w1[:, 0:1] * x[0:1, :] + w1[:, 1:2] * x[1:2, :] + b1_ref[...]   # (128, TB)
    h = jnp.maximum(h, 0.0)                                             # ReLU

    # fc2 + 2-class softmax fused: only the logit DIFFERENCE is needed.
    #   d[b] = sum_j h[j,b] * (w2[1,j] - w2[0,j]) + (b2[1] - b2[0])
    d = jnp.sum(h * w2d_ref[...], axis=0, keepdims=True) + b2d_ref[0]   # (1, TB)

    # softmax([l0, l1]) == [sigmoid(-d), sigmoid(d)]  (exact, numerically stable)
    p1 = 1.0 / (1.0 + jnp.exp(-d))                   # exp on EUP, rest on VPU
    p0 = 1.0 / (1.0 + jnp.exp(d))                    # avoids 1-p1 underflow to 0.0

    # Two lane-dense row stores (no concatenate / lane interleave).
    o_ref[0:1, :] = p0
    o_ref[1:2, :] = p1


def _round_up(n, m):
    return ((n + m - 1) // m) * m


@functools.partial(jax.jit, static_argnames=("block_b",))
def policy_forward(x, w1, b1, w2, b2, *, block_b=4096):
    """x: (B, 2). PyTorch-convention params: w1 (128,2), b1 (128,), w2 (2,128), b2 (2,)."""
    B = x.shape[0]
    H, IN = w1.shape                                 # (128, 2)
    C = w2.shape[0]                                  # 2
    LANE = 128

    # ---- batch tiling: lane-aligned tiles, evened across the grid, >=2 steps when possible
    B_aligned = _round_up(max(B, 1), LANE)
    num_tiles = max(1, -(-B_aligned // block_b))
    if num_tiles < 2 and B_aligned >= 2 * LANE:
        num_tiles = 2                                # let ("parallel",) shard across v7x's 2 TCs
    TB = _round_up(-(-B_aligned // num_tiles), LANE)
    Bp = TB * num_tiles

    # ---- transpose so batch is the lane axis; pad to the grid extent
    xt = jnp.transpose(x).astype(jnp.float32)        # (2, B)
    if Bp != B:
        xt = jnp.pad(xt, ((0, 0), (0, Bp - B)))

    # ---- weight preprocessing (fused into this jit; trivially cheap)
    w1k = w1.astype(jnp.float32)                                      # (128, 2)
    b1k = b1.reshape(H, 1).astype(jnp.float32)                        # (128, 1)
    w2d = (w2[1, :] - w2[0, :]).reshape(H, 1).astype(jnp.float32)     # (128, 1)
    b2d = (b2[1] - b2[0]).reshape(1).astype(jnp.float32)              # (1,) SMEM scalar

    out_t = pl.pallas_call(
        policy_kernel,
        out_shape=jax.ShapeDtypeStruct((C, Bp), jnp.float32),
        grid=(num_tiles,),
        in_specs=[
            pl.BlockSpec((IN, TB), lambda i: (0, i)),     # x^T tiles over batch (lane axis)
            pl.BlockSpec((H, IN), lambda i: (0, 0)),      # w1, VMEM-resident
            pl.BlockSpec((H, 1), lambda i: (0, 0)),       # b1
            pl.BlockSpec((H, 1), lambda i: (0, 0)),       # w2[1]-w2[0]
            pl.BlockSpec(memory_space=pltpu.MemorySpace.SMEM),  # b2[1]-b2[0] scalar
        ],
        out_specs=pl.BlockSpec((C, TB), lambda i: (0, i)),
        compiler_params=pltpu.CompilerParams(
            dimension_semantics=("parallel",),            # batch axis shards across TCs (v7x)
        ),
    )(xt, w1k, b1k, w2d, b2d)

    return jnp.transpose(out_t[:, :B])                    # back to (B, 2)


def init_params(key):
    # nn.Linear-style uniform(-1/sqrt(fan_in), 1/sqrt(fan_in)), PyTorch layout.
    k1, k2, k3, k4 = jax.random.split(key, 4)
    bound1 = 1.0 / jnp.sqrt(2.0)
    bound2 = 1.0 / jnp.sqrt(128.0)
    w1 = jax.random.uniform(k1, (128, 2), jnp.float32, -bound1, bound1)   # fc1.weight
    b1 = jax.random.uniform(k2, (128,), jnp.float32, -bound1, bound1)     # fc1.bias
    w2 = jax.random.uniform(k3, (2, 128), jnp.float32, -bound2, bound2)   # fc2.weight
    b2 = jax.random.uniform(k4, (2,), jnp.float32, -bound2, bound2)       # fc2.bias
    return w1, b1, w2, b2


def reference_forward(x, w1, b1, w2, b2):
    h = jnp.maximum(x @ w1.T + b1, 0.0)
    logits = h @ w2.T + b2
    return jax.nn.softmax(logits, axis=-1)


if __name__ == "__main__":
    key = jax.random.PRNGKey(0)
    kx, kp = jax.random.split(key)

    B = 8
    x = jax.random.normal(kx, (B, 2), jnp.float32)
    w1, b1, w2, b2 = init_params(kp)

    out = policy_forward(x, w1, b1, w2, b2)
    out = jax.block_until_ready(out)

    ref = reference_forward(x, w1, b1, w2, b2)
    assert out.shape == (B, 2)
    assert jnp.allclose(out, ref, atol=1e-5, rtol=1e-5)
    # softmax rows must sum to 1
    assert jnp.allclose(jnp.sum(out, axis=-1), jnp.ones((B,)), atol=1e-5)

    print("KERNEL_OK")
</pallas_src>

<mosaic_0001>
module attributes {stable_mosaic.version = 11 : i64} {
  func.func @policy_kernel(%arg0: i32, %arg1: memref<2x128xf32, #tpu.memory_space<vmem>>, %arg2: memref<128x2xf32, #tpu.memory_space<vmem>>, %arg3: memref<128x1xf32, #tpu.memory_space<vmem>>, %arg4: memref<128x1xf32, #tpu.memory_space<vmem>>, %arg5: memref<1xf32, #tpu.memory_space<smem>>, %arg6: memref<2x128xf32, #tpu.memory_space<vmem>>) attributes {dimension_semantics = [#tpu.dimension_semantics<parallel>], iteration_bounds = array<i64: 1>, scalar_prefetch = 0 : i64, scratch_operands = 0 : i64, tpu.core_type = #tpu.core_type<tc>, window_params = [{transform_indices = @transform_0, window_bounds = array<i64: 2, 128>}, {pipeline_mode = #tpu.pipeline_mode<synchronous>, transform_indices = @transform_1, window_bounds = array<i64: 128, 2>}, {pipeline_mode = #tpu.pipeline_mode<synchronous>, transform_indices = @transform_2, window_bounds = array<i64: 128, 1>}, {pipeline_mode = #tpu.pipeline_mode<synchronous>, transform_indices = @transform_3, window_bounds = array<i64: 128, 1>}, {transform_indices = @transform_4, window_bounds = array<i64: 1>}, {transform_indices = @transform_5, window_bounds = array<i64: 2, 128>}]} {
    %c0 = arith.constant 0 : index
    %c0_0 = arith.constant 0 : index
    %0 = vector.load %arg1[%c0, %c0_0] : memref<2x128xf32, #tpu.memory_space<vmem>>, vector<2x128xf32>
    %c0_1 = arith.constant 0 : index
    %c0_2 = arith.constant 0 : index
    %1 = vector.load %arg2[%c0_1, %c0_2] : memref<128x2xf32, #tpu.memory_space<vmem>>, vector<128x2xf32>
    %2 = vector.extract_strided_slice %1 {offsets = [0, 0], sizes = [128, 1], strides = [1, 1]} : vector<128x2xf32> to vector<128x1xf32>
    %3 = vector.extract_strided_slice %0 {offsets = [0, 0], sizes = [1, 128], strides = [1, 1]} : vector<2x128xf32> to vector<1x128xf32>
    %4 = vector.broadcast %2 : vector<128x1xf32> to vector<128x128xf32>
    %5 = vector.broadcast %3 : vector<1x128xf32> to vector<128x128xf32>
    %6 = arith.mulf %4, %5 : vector<128x128xf32>
    %7 = vector.extract_strided_slice %1 {offsets = [0, 1], sizes = [128, 1], strides = [1, 1]} : vector<128x2xf32> to vector<128x1xf32>
    %8 = vector.extract_strided_slice %0 {offsets = [1, 0], sizes = [1, 128], strides = [1, 1]} : vector<2x128xf32> to vector<1x128xf32>
    %9 = vector.broadcast %7 : vector<128x1xf32> to vector<128x128xf32>
    %10 = vector.broadcast %8 : vector<1x128xf32> to vector<128x128xf32>
    %11 = arith.mulf %9, %10 : vector<128x128xf32>
    %12 = arith.addf %6, %11 : vector<128x128xf32>
    %c0_3 = arith.constant 0 : index
    %c0_4 = arith.constant 0 : index
    %13 = vector.load %arg3[%c0_3, %c0_4] : memref<128x1xf32, #tpu.memory_space<vmem>>, vector<128x1xf32>
    %14 = vector.broadcast %13 : vector<128x1xf32> to vector<128x128xf32>
    %15 = arith.addf %12, %14 : vector<128x128xf32>
    %cst = arith.constant 0.000000e+00 : f32
    %16 = vector.broadcast %cst : f32 to vector<128x128xf32>
    %17 = arith.maximumf %15, %16 : vector<128x128xf32>
    %c0_5 = arith.constant 0 : index
    %c0_6 = arith.constant 0 : index
    %18 = vector.load %arg4[%c0_5, %c0_6] : memref<128x1xf32, #tpu.memory_space<vmem>>, vector<128x1xf32>
    %19 = vector.broadcast %18 : vector<128x1xf32> to vector<128x128xf32>
    %20 = arith.mulf %17, %19 : vector<128x128xf32>
    %cst_7 = arith.constant dense<0.000000e+00> : vector<128xf32>
    %21 = vector.multi_reduction <add>, %20, %cst_7 [0] : vector<128x128xf32> to vector<128xf32>
    %22 = vector.shape_cast %21 : vector<128xf32> to vector<1x128xf32>
    %c0_8 = arith.constant 0 : index
    %23 = memref.load %arg5[%c0_8] : memref<1xf32, #tpu.memory_space<smem>>
    %24 = vector.broadcast %23 : f32 to vector<1x128xf32>
    %25 = arith.addf %22, %24 : vector<1x128xf32>
    %cst_9 = arith.constant 0.000000e+00 : f32
    %26 = vector.broadcast %cst_9 : f32 to vector<1x128xf32>
    %27 = arith.subf %26, %25 : vector<1x128xf32>
    %28 = math.exp %27 : vector<1x128xf32>
    %cst_10 = arith.constant 1.000000e+00 : f32
    %29 = vector.broadcast %cst_10 : f32 to vector<1x128xf32>
    %30 = arith.addf %29, %28 : vector<1x128xf32>
    %cst_11 = arith.constant 1.000000e+00 : f32
    %31 = vector.broadcast %cst_11 : f32 to vector<1x128xf32>
    %32 = arith.divf %31, %30 : vector<1x128xf32>
    %33 = math.exp %25 : vector<1x128xf32>
    %cst_12 = arith.constant 1.000000e+00 : f32
    %34 = vector.broadcast %cst_12 : f32 to vector<1x128xf32>
    %35 = arith.addf %34, %33 : vector<1x128xf32>
    %cst_13 = arith.constant 1.000000e+00 : f32
    %36 = vector.broadcast %cst_13 : f32 to vector<1x128xf32>
    %37 = arith.divf %36, %35 : vector<1x128xf32>
    %c0_14 = arith.constant 0 : index
    %c0_15 = arith.constant 0 : index
    %38 = vector.load %arg6[%c0_14, %c0_15] : memref<2x128xf32, #tpu.memory_space<vmem>>, vector<1x128xf32>
    tpu.vector_store %arg6[%c0_14, %c0_15], %37 {strides = array<i32>} : memref<2x128xf32, #tpu.memory_space<vmem>>, vector<1x128xf32>,
    %c1 = arith.constant 1 : index
    %c0_16 = arith.constant 0 : index
    %39 = vector.load %arg6[%c1, %c0_16] : memref<2x128xf32, #tpu.memory_space<vmem>>, vector<1x128xf32>
    tpu.vector_store %arg6[%c1, %c0_16], %32 {strides = array<i32>} : memref<2x128xf32, #tpu.memory_space<vmem>>, vector<1x128xf32>,
    return
  }
  func.func @transform_0(%arg0: i32) -> (i32, i32) {
    %c0_i32 = arith.constant 0 : i32
    %c0_i32_0 = arith.constant 0 : i32
    return %c0_i32, %arg0 : i32, i32
  }
  func.func @transform_1(%arg0: i32) -> (i32, i32) {
    %c0_i32 = arith.constant 0 : i32
    %c0_i32_0 = arith.constant 0 : i32
    %c0_i32_1 = arith.constant 0 : i32
    return %c0_i32, %c0_i32_0 : i32, i32
  }
  func.func @transform_2(%arg0: i32) -> (i32, i32) {
    %c0_i32 = arith.constant 0 : i32
    %c0_i32_0 = arith.constant 0 : i32
    %c0_i32_1 = arith.constant 0 : i32
    return %c0_i32, %c0_i32_0 : i32, i32
  }
  func.func @transform_3(%arg0: i32) -> (i32, i32) {
    %c0_i32 = arith.constant 0 : i32
    %c0_i32_0 = arith.constant 0 : i32
    %c0_i32_1 = arith.constant 0 : i32
    return %c0_i32, %c0_i32_0 : i32, i32
  }
  func.func @transform_4(%arg0: i32) -> i32 {
    %c0_i32 = arith.constant 0 : i32
    %c0_i32_0 = arith.constant 0 : i32
    return %c0_i32 : i32
  }
  func.func @transform_5(%arg0: i32) -> (i32, i32) {
    %c0_i32 = arith.constant 0 : i32
    %c0_i32_0 = arith.constant 0 : i32
    return %c0_i32, %arg0 : i32, i32
  }
}

</mosaic_0001>

<bundles_post_ra>
// kernel: policy_forward.1
= control target key start
LH: loop header
LB: loop body
LE: loop exit
PB: predicated region body
PF: predicated region fallthrough
CT: control target
= control target key end

     0   :  { %v538_v0 = vmov 1   ;;  %v539_v1 = vmov 0   ;;  %v118_v46 = vlaneseq  ;;  %s820_s1 = inlined_call_operand.vmem [shape: f32[128,2], index: 1, kind: input, shape index: {}]   ;;  %s821_s2 = inlined_call_operand.vmem [shape: f32[128,1], index: 2, kind: input, shape index: {}]   ;;  %s822_s3 = inlined_call_operand.vmem [shape: f32[128,1], index: 3, kind: input, shape index: {}]   ;;  %s823_s0 = inlined_call_operand.vmem [shape: f32[2,128], index: 0, kind: input, shape index: {}]   ;;  %s824_s4 = inlined_call_operand.<no memory space> [shape: f32[1], index: 4, kind: input, shape index: {}]   ;;  %s825_s5 = inlined_call_operand.vmem [shape: f32[2,128], index: 5, kind: output, shape index: {}]  }
   0x1   :  { %522 = vset.pattern.permute.xlu0 %v538_v0  ;;  %521 = vset.pattern.permute.xlu1 %v539_v1  ;;  %v24_v2 = vld [vmem:[%s820_s1 + $0x10] sm:$0xff]  ;;  %v22_v3 = vld [vmem:[%s820_s1] sm:$0xff]  ;;  %v25_v4 = vld [vmem:[%s820_s1 + $0x18] sm:$0xff] }
   0x2   :  { %50 = vperm.xlu1 %521, %v24_v2   ;;  %139 = vperm.xlu0 %522, %v22_v3   ;;  %v27_v5 = vld [vmem:[%s820_s1 + $0x28] sm:$0xff]  ;;  %v29_v6 = vld [vmem:[%s820_s1 + $0x38] sm:$0xff]  ;;  %v34_v10 = vld [vmem:[%s820_s1 + $0x60] sm:$0xff]  ;;  %v119_v47 = vshrl.u32 %v118_v46, 7 }
   0x3   :  { %v31_v7 = vld [vmem:[%s820_s1 + $0x48] sm:$0xff]  ;;  %v33_v8 = vld [vmem:[%s820_s1 + $0x58] sm:$0xff]  ;;  %v26_v13 = vld [vmem:[%s820_s1 + $0x20] sm:$0xff] }
   0x4   :  { %v35_v9 = vld [vmem:[%s820_s1 + $0x68] sm:$0xff]  ;;  %v602_v11 = vld [vmem:[%s820_s1 + $0x78] sm:$0xff]  ;;  %v28_v14 = vld [vmem:[%s820_s1 + $0x30] sm:$0xff]  ;;  %v204_v48 = vsub.s32 1, %v119_v47  ;;  %v120_v49 = vsub.s32 0, %v119_v47 }
   0x5   :  { %v23_v12 = vld [vmem:[%s820_s1 + $0x8] sm:$0xff]  ;;  %v30_v15 = vld [vmem:[%s820_s1 + $0x40] sm:$0xff]  ;;  %v32_v16 = vld [vmem:[%s820_s1 + $0x50] sm:$0xff] }
   0x6   :  { %55 = vperm.xlu1 %521, %v25_v4   ;;  %151 = vperm.xlu0 %522, %v25_v4   ;;  %v238_v17 = vld [vmem:[%s821_s2] sm:$0xff]  ;;  %v36_v18 = vld [vmem:[%s820_s1 + $0x70] sm:$0xff]  ;;  %v239_v20 = vld [vmem:[%s821_s2 + $0x8] sm:$0xff] }
   0x7   :  { %v240_v19 = vld [vmem:[%s821_s2 + $0x10] sm:$0xff]  ;;  %v241_v21 = vld [vmem:[%s821_s2 + $0x18] sm:$0xff]  ;;  %v366_v22 = vld [vmem:[%s822_s3] sm:$0xff] }
   0x8   :  { %v367_v23 = vld [vmem:[%s822_s3 + $0x8] sm:$0xff]  ;;  %v242_v24 = vld [vmem:[%s821_s2 + $0x20] sm:$0xff]  ;;  %v368_v25 = vld [vmem:[%s822_s3 + $0x10] sm:$0xff] }
   0x9   :  { %v243_v26 = vld [vmem:[%s821_s2 + $0x28] sm:$0xff]  ;;  %v369_v27 = vld [vmem:[%s822_s3 + $0x18] sm:$0xff]  ;;  %v244_v28 = vld [vmem:[%s821_s2 + $0x30] sm:$0xff] }
   0xa   :  { %65 = vperm.xlu1 %521, %v27_v5   ;;  %159 = vperm.xlu0 %522, %v27_v5   ;;  %v370_v29 = vld [vmem:[%s822_s3 + $0x20] sm:$0xff]  ;;  %v245_v30 = vld [vmem:[%s821_s2 + $0x38] sm:$0xff]  ;;  %v371_v31 = vld [vmem:[%s822_s3 + $0x28] sm:$0xff] }
   0xb   :  { %v246_v32 = vld [vmem:[%s821_s2 + $0x40] sm:$0xff]  ;;  %v372_v33 = vld [vmem:[%s822_s3 + $0x30] sm:$0xff]  ;;  %v247_v34 = vld [vmem:[%s821_s2 + $0x48] sm:$0xff] }
   0xc   :  { %v373_v35 = vld [vmem:[%s822_s3 + $0x38] sm:$0xff]  ;;  %v375_v36 = vld [vmem:[%s822_s3 + $0x48] sm:$0xff]  ;;  %v248_v37 = vld [vmem:[%s821_s2 + $0x50] sm:$0xff] }
   0xd   :  { %v376_v38 = vld [vmem:[%s822_s3 + $0x50] sm:$0xff]  ;;  %v374_v39 = vld [vmem:[%s822_s3 + $0x40] sm:$0xff]  ;;  %v251_v40 = vld [vmem:[%s821_s2 + $0x68] sm:$0xff] }
   0xe   :  { %75 = vperm.xlu1 %521, %v29_v6   ;;  %167 = vperm.xlu0 %522, %v29_v6   ;;  %v249_v41 = vld [vmem:[%s821_s2 + $0x58] sm:$0xff]  ;;  %v252_v42 = vld [vmem:[%s821_s2 + $0x70] sm:$0xff]  ;;  %v250_v44 = vld [vmem:[%s821_s2 + $0x60] sm:$0xff] }
   0xf   :  { %v253_v43 = vld [vmem:[%s821_s2 + $0x78] sm:$0xff]  ;;  %v380_v45 = vld [vmem:[%s822_s3 + $0x70] sm:$0xff]  ;;  %v21_v51 = vld [vmem:[%s823_s0] sm:$0x3] }
  0x10   :  { %v377_v53 = vld [vmem:[%s822_s3 + $0x58] sm:$0xff]  ;;  %v722_v54 = vrot.slane %v21_v51, %v204_v48  ;;  %v725_v55 = vrot.slane %v21_v51, %v120_v49  ;;  %v378_v58 = vld [vmem:[%s822_s3 + $0x60] sm:$0xff] }
  0x11   :  { %v381_v6 = vld [vmem:[%s822_s3 + $0x78] sm:$0xff] }
  0x12   :  { %85 = vperm.xlu1 %521, %v31_v7   ;;  %175 = vperm.xlu0 %522, %v31_v7  }
  0x16   :  { %95 = vperm.xlu1 %521, %v33_v8   ;;  %183 = vperm.xlu0 %522, %v33_v8  }
  0x1a   :  { %105 = vperm.xlu1 %521, %v35_v9   ;;  %187 = vperm.xlu0 %522, %v34_v10  }
  0x1e   :  { %115 = vperm.xlu1 %521, %v602_v11   ;;  %191 = vperm.xlu0 %522, %v35_v9  }
  0x22   :  { %523 = vset.pattern.permute.xlu1 %v538_v0  ;;  %525 = vset.pattern.permute.xlu0 %v539_v1 }
  0x23   :  { %143 = vperm.xlu1 %523, %v23_v12   ;;  %40 = vperm.xlu0 %525, %v22_v3  }
  0x27   :  { %147 = vperm.xlu1 %523, %v24_v2   ;;  %45 = vperm.xlu0 %525, %v23_v12  }
  0x2b   :  { %155 = vperm.xlu1 %523, %v26_v13   ;;  %60 = vperm.xlu0 %525, %v26_v13  }
  0x2f   :  { %163 = vperm.xlu1 %523, %v28_v14   ;;  %70 = vperm.xlu0 %525, %v28_v14  }
  0x33   :  { %171 = vperm.xlu1 %523, %v30_v15   ;;  %80 = vperm.xlu0 %525, %v30_v15  }
  0x37   :  { %179 = vperm.xlu1 %523, %v32_v16   ;;  %90 = vperm.xlu0 %525, %v32_v16  }
  0x3b   :  { %524 = vset.pattern.permute.xlu1 %v539_v1  ;;  %100 = vperm.xlu0 %525, %v34_v10  }
  0x3c   :  { %256 = vperm.xlu1 %524, %v238_v17  }
  0x3f   :  { %110 = vperm.xlu0 %525, %v36_v18  }
  0x40   :  { %266 = vperm.xlu1 %524, %v240_v19  }
  0x43   :  { %261 = vperm.xlu0 %525, %v239_v20  }
  0x44   :  { %271 = vperm.xlu1 %524, %v241_v21  }
  0x47   :  { %384 = vperm.xlu0 %525, %v366_v22  }
  0x48   :  { %389 = vperm.xlu1 %524, %v367_v23  }
  0x4b   :  { %276 = vperm.xlu0 %525, %v242_v24  }
  0x4c   :  { %394 = vperm.xlu1 %524, %v368_v25  }
  0x4f   :  { %281 = vperm.xlu0 %525, %v243_v26  }
  0x50   :  { %399 = vperm.xlu1 %524, %v369_v27  }
  0x53   :  { %286 = vperm.xlu0 %525, %v244_v28  }
  0x54   :  { %404 = vperm.xlu1 %524, %v370_v29  }
  0x57   :  { %291 = vperm.xlu0 %525, %v245_v30  }
  0x58   :  { %409 = vperm.xlu1 %524, %v371_v31  }
  0x5b   :  { %296 = vperm.xlu0 %525, %v246_v32  }
  0x5c   :  { %414 = vperm.xlu1 %524, %v372_v33  }
  0x5f   :  { %301 = vperm.xlu0 %525, %v247_v34  }
  0x60   :  { %419 = vperm.xlu1 %524, %v373_v35  }
  0x63   :  { %429 = vperm.xlu0 %525, %v375_v36  }
  0x64   :  { %306 = vperm.xlu1 %524, %v248_v37  }
  0x67   :  { %434 = vperm.xlu0 %525, %v376_v38  }
  0x68   :  { %424 = vperm.xlu1 %524, %v374_v39  }
  0x6b   :  { %321 = vperm.xlu0 %525, %v251_v40  }
  0x6c   :  { %311 = vperm.xlu1 %524, %v249_v41  }
  0x6f   :  { %326 = vperm.xlu0 %525, %v252_v42  }
  0x70   :  { %526 = vset.pattern.permute.xlu1 %v538_v0 }
  0x71   :  { %195 = vperm.xlu1 %526, %v36_v18  }
  0x73   :  { %331 = vperm.xlu0 %525, %v253_v43  }
  0x75   :  { %527 = vset.pattern.permute.xlu1 %v539_v1 }
  0x76   :  { %316 = vperm.xlu1 %527, %v250_v44  }
  0x77   :  { %454 = vperm.xlu0 %525, %v380_v45  }
  0x7a   :  { %528 = vset.pattern.permute.xlu1 %v538_v0  ;;  %v379_v0 = vld [vmem:[%s822_s3 + $0x68] sm:$0xff] }
  0x7b   :  { %199 = vperm.xlu1 %528, %v602_v11  }
  0x7d   :  { %v714_v50 = vpop.permute.xlu1 %50  ;;  %v140_v52 = vpop.permute.xlu0 %139 }
  0x7e   :  { %v206_v42 = vmul.f32 %v722_v54, %v140_v52 }
  0x7f   :  { %529 = vset.pattern.permute.xlu1 %v539_v1 }
  0x80   :  { %439 = vperm.xlu1 %529, %v377_v53   ;;  %v124_v53 = vmul.f32 %v725_v55, %v714_v50 }
  0x81   :  { %v56_v56 = vpop.permute.xlu1 %55  ;;  %v152_v57 = vpop.permute.xlu0 %151 }
  0x82   :  { %v125_v59 = vmul.f32 %v725_v55, %v56_v56  ;;  %v209_v60 = vmul.f32 %v722_v54, %v152_v57 }
  0x84   :  { %444 = vperm.xlu1 %529, %v378_v58   ;;  %v732_v61 = vadd.f32 %v209_v60, %v125_v59 }
  0x85   :  { %v66_v62 = vpop.permute.xlu1 %65  ;;  %v160_v63 = vpop.permute.xlu0 %159 }
  0x86   :  { %v127_v1 = vmul.f32 %v725_v55, %v66_v62  ;;  %v211_v2 = vmul.f32 %v722_v54, %v160_v63 }
  0x88   :  { %449 = vperm.xlu1 %529, %v379_v0   ;;  %v739_v3 = vadd.f32 %v211_v2, %v127_v1 }
  0x89   :  { %v76_v4 = vpop.permute.xlu1 %75  ;;  %v168_v5 = vpop.permute.xlu0 %167 }
  0x8a   :  { %v129_v7 = vmul.f32 %v725_v55, %v76_v4  ;;  %v213_v8 = vmul.f32 %v722_v54, %v168_v5 }
  0x8c   :  { %459 = vperm.xlu1 %529, %v381_v6   ;;  %v746_v9 = vadd.f32 %v213_v8, %v129_v7 }
  0x8d   :  { %v86_v10 = vpop.permute.xlu1 %85  ;;  %v176_v11 = vpop.permute.xlu0 %175 }
  0x8e   :  { %v131_v12 = vmul.f32 %v725_v55, %v86_v10  ;;  %v215_v13 = vmul.f32 %v722_v54, %v176_v11 }
  0x90   :  { %v750_v14 = vadd.f32 %v215_v13, %v131_v12 }
  0x91   :  { %v96_v15 = vpop.permute.xlu1 %95  ;;  %v184_v16 = vpop.permute.xlu0 %183 }
  0x92   :  { %v133_v17 = vmul.f32 %v725_v55, %v96_v15  ;;  %v217_v18 = vmul.f32 %v722_v54, %v184_v16 }
  0x94   :  { %v754_v19 = vadd.f32 %v217_v18, %v133_v17 }
  0x95   :  { %v106_v20 = vpop.permute.xlu1 %105  ;;  %v756_v21 = vpop.permute.xlu0 %187 }
  0x96   :  { %v135_v24 = vmul.f32 %v725_v55, %v106_v20 }
  0x99   :  { %v758_v22 = vpop.permute.xlu1 %115  ;;  %v192_v23 = vpop.permute.xlu0 %191 }
  0x9a   :  { %v219_v25 = vmul.f32 %v722_v54, %v192_v23 }
  0x9c   :  { %v762_v26 = vadd.f32 %v219_v25, %v135_v24 }
  0x9e   :  { %v144_v27 = vpop.permute.xlu1 %143  ;;  %v41_v28 = vpop.permute.xlu0 %40 }
  0x9f   :  { %v122_v40 = vmul.f32 %v725_v55, %v41_v28  ;;  %v207_v45 = vmul.f32 %v722_v54, %v144_v27 }
  0xa1   :  { %v222_v46 = vadd.f32 %v206_v42, %v122_v40 }
  0xa2   :  { %v148_v29 = vpop.permute.xlu1 %147  ;;  %v46_v30 = vpop.permute.xlu0 %45 }
  0xa3   :  { %v123_v43 = vmul.f32 %v725_v55, %v46_v30  ;;  %v208_v48 = vmul.f32 %v722_v54, %v148_v29 }
  0xa5   :  { %v223_v51 = vadd.f32 %v207_v45, %v123_v43  ;;  %v224_v59 = vadd.f32 %v208_v48, %v124_v53 }
  0xa6   :  { %v156_v31 = vpop.permute.xlu1 %155  ;;  %v61_v32 = vpop.permute.xlu0 %60 }
  0xa7   :  { %v210_v2 = vmul.f32 %v722_v54, %v156_v31  ;;  %v126_v4 = vmul.f32 %v725_v55, %v61_v32 }
  0xa9   :  { %v226_v11 = vadd.f32 %v210_v2, %v126_v4 }
  0xaa   :  { %v164_v33 = vpop.permute.xlu1 %163  ;;  %v71_v34 = vpop.permute.xlu0 %70 }
  0xab   :  { %v212_v20 = vmul.f32 %v722_v54, %v164_v33  ;;  %v128_v23 = vmul.f32 %v725_v55, %v71_v34 }
  0xad   :  { %v228_v30 = vadd.f32 %v212_v20, %v128_v23 }
  0xae   :  { %v764_v35 = vpop.permute.xlu1 %171  ;;  %v766_v36 = vpop.permute.xlu0 %80 }
  0xb2   :  { %v768_v37 = vpop.permute.xlu1 %179  ;;  %v770_v38 = vpop.permute.xlu0 %90 }
  0xb6   :  { %v772_v39 = vpop.permute.xlu0 %100 }
  0xb7   :  { %v257_v41 = vpop.permute.xlu1 %256 }
  0xb8   :  { %v334_v49 = vadd.f32 %v257_v41, %v222_v46 }
  0xba   :  { %v777_v44 = vpop.permute.xlu0 %110  ;;  %v350_v52 = vmax.f32 %v334_v49, 0.0  ;;  %v130_v49 = vmul.f32 %v725_v55, %v766_v36 }
  0xbb   :  { %v267_v47 = vpop.permute.xlu1 %266 }
  0xbc   :  { %v336_v62 = vadd.f32 %v267_v47, %v224_v59 }
  0xbe   :  { %v262_v56 = vpop.permute.xlu0 %261  ;;  %v352_v6 = vmax.f32 %v336_v62, 0.0 }
  0xbf   :  { %v335_v57 = vadd.f32 %v262_v56, %v223_v51  ;;  %v272_v58 = vpop.permute.xlu1 %271 }
  0xc0   :  { %v337_v7 = vadd.f32 %v272_v58, %v732_v61 }
  0xc1   :  { %v351_v60 = vmax.f32 %v335_v57, 0.0 }
  0xc2   :  { %v385_v63 = vpop.permute.xlu0 %384  ;;  %v353_v13 = vmax.f32 %v337_v7, 0.0 }
  0xc3   :  { %v462_v0 = vmul.f32 %v385_v63, %v350_v52  ;;  %v390_v1 = vpop.permute.xlu1 %389 }
  0xc4   :  { %v463_v5 = vmul.f32 %v390_v1, %v351_v60 }
  0xc6   :  { %v478_v8 = vadd.f32 %v463_v5, %v462_v0  ;;  %v277_v50 = vpop.permute.xlu0 %276 }
  0xc7   :  { %v395_v10 = vpop.permute.xlu1 %394  ;;  %v338_v15 = vadd.f32 %v277_v50, %v226_v11  ;;  %v132_v50 = vmul.f32 %v725_v55, %v770_v38  ;;  %v136_v38 = vmul.f32 %v725_v55, %v777_v44 }
  0xc8   :  { %v464_v12 = vmul.f32 %v395_v10, %v352_v6 }
  0xc9   :  { %v354_v25 = vmax.f32 %v338_v15, 0.0 }
  0xca   :  { %v479_v16 = vadd.f32 %v478_v8, %v464_v12  ;;  %v282_v17 = vpop.permute.xlu0 %281  ;;  %v216_v8 = vmul.f32 %v722_v54, %v768_v37 }
  0xcb   :  { %v400_v18 = vpop.permute.xlu1 %399  ;;  %v339_v27 = vadd.f32 %v282_v17, %v739_v3  ;;  %v214_v3 = vmul.f32 %v722_v54, %v764_v35 }
  0xcc   :  { %v465_v24 = vmul.f32 %v400_v18, %v353_v13  ;;  %v218_v18 = vmul.f32 %v722_v54, %v756_v21  ;;  %v137_v21 = vmul.f32 %v725_v55, %v758_v22 }
  0xcd   :  { %v355_v32 = vmax.f32 %v339_v27, 0.0  ;;  %v230_v58 = vadd.f32 %v214_v3, %v130_v49 }
  0xce   :  { %v480_v28 = vadd.f32 %v479_v16, %v465_v24  ;;  %v287_v61 = vpop.permute.xlu0 %286  ;;  %v134_v16 = vmul.f32 %v725_v55, %v772_v39 }
  0xcf   :  { %v405_v29 = vpop.permute.xlu1 %404  ;;  %v340_v40 = vadd.f32 %v287_v61, %v228_v30 }
  0xd0   :  { %v466_v31 = vmul.f32 %v405_v29, %v354_v25  ;;  %v234_v24 = vadd.f32 %v218_v18, %v134_v16 }
  0xd1   :  { %v356_v46 = vmax.f32 %v340_v40, 0.0 }
  0xd2   :  { %v292_v41 = vpop.permute.xlu0 %291  ;;  %v481_v43 = vadd.f32 %v480_v28, %v466_v31 }
  0xd3   :  { %v410_v42 = vpop.permute.xlu1 %409  ;;  %v341_v33 = vadd.f32 %v292_v41, %v746_v9 }
  0xd4   :  { %v467_v45 = vmul.f32 %v410_v42, %v355_v32 }
  0xd5   :  { %v357_v53 = vmax.f32 %v341_v33, 0.0 }
  0xd6   :  { %v482_v47 = vadd.f32 %v481_v43, %v467_v45  ;;  %v297_v34 = vpop.permute.xlu0 %296 }
  0xd7   :  { %v415_v48 = vpop.permute.xlu1 %414  ;;  %v342_v60 = vadd.f32 %v297_v34, %v230_v58 }
  0xd8   :  { %v468_v51 = vmul.f32 %v415_v48, %v356_v46 }
  0xd9   :  { %v358_v0 = vmax.f32 %v342_v60, 0.0 }
  0xda   :  { %v302_v56 = vpop.permute.xlu0 %301  ;;  %v483_v59 = vadd.f32 %v482_v47, %v468_v51 }
  0xdb   :  { %v420_v57 = vpop.permute.xlu1 %419  ;;  %v343_v62 = vadd.f32 %v302_v56, %v750_v14  ;;  %v232_v14 = vadd.f32 %v216_v8, %v132_v50 }
  0xdc   :  { %v469_v52 = vmul.f32 %v420_v57, %v357_v53 }
  0xdd   :  { %v359_v1 = vmax.f32 %v343_v62, 0.0 }
  0xde   :  { %v484_v9 = vadd.f32 %v483_v59, %v469_v52  ;;  %v430_v2 = vpop.permute.xlu0 %429 }
  0xdf   :  { %v307_v63 = vpop.permute.xlu1 %306  ;;  %v471_v5 = vmul.f32 %v430_v2, %v359_v1 }
  0xe0   :  { %v344_v12 = vadd.f32 %v307_v63, %v232_v14 }
  0xe2   :  { %v435_v11 = vpop.permute.xlu0 %434  ;;  %v360_v17 = vmax.f32 %v344_v12, 0.0 }
  0xe3   :  { %v425_v4 = vpop.permute.xlu1 %424 }
  0xe4   :  { %v470_v35 = vmul.f32 %v425_v4, %v358_v0  ;;  %v472_v25 = vmul.f32 %v435_v11, %v360_v17 }
  0xe6   :  { %v485_v6 = vadd.f32 %v484_v9, %v470_v35  ;;  %v322_v15 = vpop.permute.xlu0 %321  ;;  %v500_v9 = vstv %s824_s4 }
  0xe7   :  { %v312_v36 = vpop.permute.xlu1 %311  ;;  %v347_v32 = vadd.f32 %v322_v15, %v762_v26 }
  0xe8   :  { %v486_v7 = vadd.f32 %v485_v6, %v471_v5  ;;  %v345_v20 = vadd.f32 %v312_v36, %v754_v19 }
  0xe9   :  { %v363_v33 = vmax.f32 %v347_v32, 0.0 }
  0xea   :  { %v327_v27 = vpop.permute.xlu0 %326  ;;  %v361_v28 = vmax.f32 %v345_v20, 0.0  ;;  %v487_v19 = vadd.f32 %v486_v7, %v472_v25 }
  0xec   :  { %v196_v10 = vpop.permute.xlu1 %195 }
  0xed   :  { %v220_v37 = vmul.f32 %v722_v54, %v196_v10 }
  0xee   :  { %v332_v43 = vpop.permute.xlu0 %331 }
  0xef   :  { %v236_v61 = vadd.f32 %v220_v37, %v136_v38 }
  0xf1   :  { %v317_v13 = vpop.permute.xlu1 %316  ;;  %v348_v41 = vadd.f32 %v327_v27, %v236_v61 }
  0xf2   :  { %v346_v29 = vadd.f32 %v317_v13, %v234_v24  ;;  %v455_v49 = vpop.permute.xlu0 %454 }
  0xf3   :  { %v364_v47 = vmax.f32 %v348_v41, 0.0 }
  0xf4   :  { %v362_v40 = vmax.f32 %v346_v29, 0.0 }
  0xf5   :  { %v476_v51 = vmul.f32 %v455_v49, %v364_v47 }
  0xf6   :  { %v200_v23 = vpop.permute.xlu1 %199 }
  0xf7   :  { %v221_v39 = vmul.f32 %v722_v54, %v200_v23 }
  0xf9   :  { %v237_v42 = vadd.f32 %v221_v39, %v137_v21 }
  0xfb   :  { %v440_v30 = vpop.permute.xlu1 %439  ;;  %v349_v48 = vadd.f32 %v332_v43, %v237_v42 }
  0xfc   :  { %v473_v31 = vmul.f32 %v440_v30, %v361_v28 }
  0xfd   :  { %v365_v22 = vmax.f32 %v349_v48, 0.0 }
  0xfe   :  { %v488_v44 = vadd.f32 %v487_v19, %v473_v31 }
  0xff   :  { %v445_v45 = vpop.permute.xlu1 %444 }
 0x100   :  { %v474_v46 = vmul.f32 %v445_v45, %v362_v40 }
 0x102   :  { %v489_v34 = vadd.f32 %v488_v44, %v474_v46 }
 0x103   :  { %v450_v54 = vpop.permute.xlu1 %449 }
 0x104   :  { %v475_v3 = vmul.f32 %v450_v54, %v363_v33 }
 0x106   :  { %v490_v55 = vadd.f32 %v489_v34, %v475_v3 }
 0x107   :  { %v460_v53 = vpop.permute.xlu1 %459 }
 0x108   :  { %v477_v56 = vmul.f32 %v460_v53, %v365_v22  ;;  %v491_v26 = vadd.f32 %v490_v55, %v476_v51 }
 0x10a   :  { %v492_v57 = vadd.f32 %v491_v26, %v477_v56 }
 0x10c   :  { %v493_v58 = vrot.slane %v492_v57, 4 }
 0x10e   :  { %v494_v59 = vadd.f32 %v493_v58, %v492_v57 }
 0x110   :  { %v495_v52 = vrot.slane %v494_v59, 2 }
 0x112   :  { %v496_v60 = vadd.f32 %v495_v52, %v494_v59 }
 0x114   :  { %v497_v62 = vrot.slane %v496_v60, 1 }
 0x116   :  { %v498_v63 = vadd.f32 %v497_v62, %v496_v60 }
 0x118   :  { %v501_v0 = vadd.f32 %v500_v9, %v498_v63 }
 0x11a   :  { %v502_v1 = vsub.f32 0.0, %v501_v0  ;;  %v508_v2 = vmul.f32 1.442695, %v501_v0 }
 0x11c   :  { %v503_v4 = vmul.f32 1.442695, %v502_v1  ;;  %530 = vpow2.f32 %v508_v2 }
 0x11e   :  { %532 = vpow2.f32 %v503_v4 }
 0x129   :  { %v531_v35 = vpop.eup %530 }
 0x12a   :  { %v510_v5 = vadd.f32 1.0, %v531_v35 }
 0x12b   :  { %v533_v6 = vpop.eup %532 }
 0x12c   :  { %v505_v36 = vadd.f32 1.0, %v533_v6  ;;  %534 = vrcp.f32 %v510_v5 }
 0x12e   :  { %536 = vrcp.f32 %v505_v36 }
 0x139   :  { %v535_v7 = vpop.eup %534 }
 0x13a   :  { %513 = vst [vmem:[%s825_s5] sm:$0x1] %v535_v7 }
 0x13b   :  { %v537_v8 = vpop.eup %536 }
 0x13c   :  { %514 = vst [vmem:[%s825_s5 + $0x1] sm:$0x1] %v537_v8 }

</bundles_post_ra>
